<compile_context>
chip_gen: v7x
topology: tpu7x:2x2x1
jax: 0.10.0
libtpu: 0.0.40
codegen_flags: <defaults>
</compile_context>

<pallas_src>
import functools
import math

import jax
import jax.numpy as jnp
from jax.experimental import pallas as pl
from jax.experimental.pallas import tpu as pltpu


def _router_kernel(x_ref, fa_ref, fp_ref,
                   wq_ref, bq_ref, wka_ref, bka_ref, wkp_ref, bkp_ref,
                   o_ref, *, compute_dtype):
    x = x_ref[...]
    fa = fa_ref[...]
    fp = fp_ref[...]
    dim = x.shape[-1]

    # Cast to the compute dtype in VMEM (free-ish VPU op) right before the MXU.
    xc = x.astype(compute_dtype)
    fac = fa.astype(compute_dtype)
    fpc = fp.astype(compute_dtype)

    # Linear projections on the MXU; accumulate in f32 regardless of input dtype.
    q = jnp.dot(xc, wq_ref[...], preferred_element_type=jnp.float32) + bq_ref[...]
    k_att = jnp.dot(fac, wka_ref[...], preferred_element_type=jnp.float32) + bka_ref[...]
    k_pde = jnp.dot(fpc, wkp_ref[...], preferred_element_type=jnp.float32) + bkp_ref[...]

    scale = 1.0 / math.sqrt(dim)
    s_att = jnp.sum(q * k_att, axis=-1, keepdims=True) * scale   # (TM, 1)
    s_pde = jnp.sum(q * k_pde, axis=-1, keepdims=True) * scale   # (TM, 1)

    # 2-way softmax([s_att, s_pde]) == sigmoid(s_att - s_pde) for the first
    # weight.  Stable: exp(-d) -> inf gives w_att -> 0, exp(-d) -> 0 gives 1.
    d = s_att - s_pde
    w_att = 1.0 / (1.0 + jnp.exp(-d))
    w_pde = 1.0 - w_att

    # Mix with the ORIGINAL-precision features (not the bf16-rounded copies).
    o_ref[...] = (w_att * fa.astype(jnp.float32)
                  + w_pde * fp.astype(jnp.float32)).astype(o_ref.dtype)


def _round_up(a, b):
    return (a + b - 1) // b * b


def _round_down(a, b):
    return a // b * b


def _pick_row_tile(n, dim, in_bytes, out_bytes, compute_bytes,
                   tm_max=2048, vmem_budget=24 << 20):
    """Largest row tile that keeps streaming buffers + intermediates in budget."""
    # Per-row VMEM: double-buffered streaming (3 in + 1 out) + live f32 q/k
    # intermediates + their compute-dtype casts.
    per_row = dim * (2 * (3 * in_bytes + out_bytes) + 3 * 4 + 3 * compute_bytes)
    weight_bytes = 3 * dim * dim * compute_bytes + 3 * dim * 4
    avail = max(vmem_budget - 2 * weight_bytes, per_row * 256)
    tm = min(tm_max, max(256, avail // per_row))
    tm = max(256, _round_down(tm, 256))
    # v7x megacore: keep >= 2 grid steps for medium/large N so one TC isn't idle.
    if n > 512:
        tm = min(tm, max(256, _round_up(pl.cdiv(n, 2), 256)))
    # Small-N clamp, multiple of 16 (bf16 sublane granule).
    tm = min(tm, _round_up(n, 16))
    return max(16, tm)


def attention_gating_router(x, feat_att, feat_pde, params, *,
                            compute_dtype=jnp.bfloat16,
                            out_dtype=None,
                            tm_max=2048):
    """Forward pass of AttentionGatingRouter.

    params: dict with wq,bq,wka,bka,wkp,bkp in PyTorch nn.Linear convention
    (weight shape = (out, in)); weights are transposed here (wrapper glue).
    """
    orig_shape = x.shape
    dim = orig_shape[-1]
    n = 1
    for s in orig_shape[:-1]:
        n *= s
    out_dtype = out_dtype or x.dtype

    # Flatten to a token-major (N, dim) slab; NO dtype cast, NO padding here.
    x2 = x.reshape(n, dim)
    fa2 = feat_att.reshape(n, dim)
    fp2 = feat_pde.reshape(n, dim)

    # nn.Linear stores (out, in); pre-transpose so q = x @ Wq^T + b.  Weights
    # are tiny relative to activations, so casting them in the wrapper is fine.
    wq_t = params["wq"].T.astype(compute_dtype)
    wka_t = params["wka"].T.astype(compute_dtype)
    wkp_t = params["wkp"].T.astype(compute_dtype)
    bq = params["bq"].reshape(1, dim).astype(jnp.float32)
    bka = params["bka"].reshape(1, dim).astype(jnp.float32)
    bkp = params["bkp"].reshape(1, dim).astype(jnp.float32)

    in_bytes = jnp.dtype(x2.dtype).itemsize
    out_bytes = jnp.dtype(out_dtype).itemsize
    compute_bytes = jnp.dtype(compute_dtype).itemsize

    tm = _pick_row_tile(n, dim, in_bytes, out_bytes, compute_bytes, tm_max=tm_max)
    grid = (pl.cdiv(n, tm),)   # partial last block is masked by Pallas

    tok_spec = pl.BlockSpec((tm, dim), lambda i: (i, 0))
    # Grid-invariant weights/biases: constant index_map => resident, no per-step
    # re-DMA.  For large dim, single-buffer them to halve their VMEM footprint.
    weight_footprint = 3 * dim * dim * compute_bytes
    if weight_footprint > (4 << 20):
        w_spec = pl.BlockSpec((dim, dim), lambda i: (0, 0),
                              pipeline_mode=pl.Buffered(1))
        b_spec = pl.BlockSpec((1, dim), lambda i: (0, 0),
                              pipeline_mode=pl.Buffered(1))
    else:
        w_spec = pl.BlockSpec((dim, dim), lambda i: (0, 0))
        b_spec = pl.BlockSpec((1, dim), lambda i: (0, 0))

    # Rough VMEM estimate; raise the scoped limit only if we need more than the
    # 32 MiB default (cap at v7x's 64 MiB physical).
    est_vmem = (2 * tm * dim * (3 * in_bytes + out_bytes)
                + tm * dim * (12 + 3 * compute_bytes)
                + (1 if weight_footprint > (4 << 20) else 2)
                * (weight_footprint + 3 * dim * 4))
    vmem_limit = None if est_vmem <= (30 << 20) else min(
        _round_up(est_vmem + (8 << 20), 1 << 20), 64 << 20)

    cost = pl.CostEstimate(
        flops=3 * 2 * n * dim * dim + 10 * n * dim,
        transcendentals=n,
        bytes_accessed=n * dim * (3 * in_bytes + out_bytes)
        + weight_footprint + 3 * dim * 4,
    )

    # TODO(synk): if dim grows large enough to be MXU-bound (>= ~400 on v5e),
    # fold the score math (precompute Wq@Wka^T / Wq@Wkp^T in the wrapper) to cut
    # per-token matmuls from 3 to 2.

    out = pl.pallas_call(
        functools.partial(_router_kernel, compute_dtype=compute_dtype),
        out_shape=jax.ShapeDtypeStruct((n, dim), out_dtype),
        grid_spec=pltpu.PrefetchScalarGridSpec(
            num_scalar_prefetch=0,
            grid=grid,
            in_specs=[tok_spec, tok_spec, tok_spec,
                      w_spec, b_spec, w_spec, b_spec, w_spec, b_spec],
            out_specs=tok_spec,
        ),
        compiler_params=pltpu.CompilerParams(
            dimension_semantics=("parallel",),
            vmem_limit_bytes=vmem_limit),
        cost_estimate=cost,
    )(x2, fa2, fp2, wq_t, bq, wka_t, bka, wkp_t, bkp)

    return out.reshape(orig_shape).astype(out_dtype)


def _reference(x, feat_att, feat_pde, params):
    dim = x.shape[-1]
    q = x @ params["wq"].T + params["bq"]
    k_att = feat_att @ params["wka"].T + params["bka"]
    k_pde = feat_pde @ params["wkp"].T + params["bkp"]
    att_score = jnp.sum(q * k_att, axis=-1, keepdims=True) / jnp.sqrt(dim * 1.0)
    pde_score = jnp.sum(q * k_pde, axis=-1, keepdims=True) / jnp.sqrt(dim * 1.0)
    scores = jnp.concatenate([att_score, pde_score], axis=-1)
    weights = jax.nn.softmax(scores, axis=-1)
    return weights[..., 0:1] * feat_att + weights[..., 1:2] * feat_pde


if __name__ == "__main__":
    key = jax.random.PRNGKey(0)
    dim = 128
    bound = 1.0 / math.sqrt(dim)   # nn.Linear default init range

    keys = jax.random.split(key, 12)
    params = {
        "wq": jax.random.uniform(keys[0], (dim, dim), jnp.float32, -bound, bound),
        "bq": jax.random.uniform(keys[1], (dim,), jnp.float32, -bound, bound),
        "wka": jax.random.uniform(keys[2], (dim, dim), jnp.float32, -bound, bound),
        "bka": jax.random.uniform(keys[3], (dim,), jnp.float32, -bound, bound),
        "wkp": jax.random.uniform(keys[4], (dim, dim), jnp.float32, -bound, bound),
        "bkp": jax.random.uniform(keys[5], (dim,), jnp.float32, -bound, bound),
    }

    # --- Case 1: small shape, exact f32 compute path, tight tolerance ------
    batch, seq = 2, 8
    x = jax.random.normal(keys[6], (batch, seq, dim), jnp.float32)
    fa = jax.random.normal(keys[7], (batch, seq, dim), jnp.float32)
    fp = jax.random.normal(keys[8], (batch, seq, dim), jnp.float32)

    out = attention_gating_router(x, fa, fp, params, compute_dtype=jnp.float32)
    out = jax.block_until_ready(out)
    ref = _reference(x, fa, fp, params)
    assert out.shape == ref.shape == (batch, seq, dim)
    assert jnp.allclose(out, ref, atol=1e-5, rtol=1e-5), \
        float(jnp.max(jnp.abs(out - ref)))

    # --- Case 2: same shape, default fast path (bf16 matmuls) --------------
    out_fast = attention_gating_router(x, fa, fp, params)
    out_fast = jax.block_until_ready(out_fast)
    assert jnp.allclose(out_fast, ref, atol=2e-2, rtol=2e-2), \
        float(jnp.max(jnp.abs(out_fast - ref)))

    # --- Case 3: token count not a tile multiple (partial last block) ------
    b2, s2 = 3, 170   # N = 510 tokens -> partial last block, masked writeback
    x3 = jax.random.normal(keys[9], (b2, s2, dim), jnp.float32)
    fa3 = jax.random.normal(keys[10], (b2, s2, dim), jnp.float32)
    fp3 = jax.random.normal(keys[11], (b2, s2, dim), jnp.float32)
    out3 = attention_gating_router(x3, fa3, fp3, params)
    out3 = jax.block_until_ready(out3)
    ref3 = _reference(x3, fa3, fp3, params)
    assert out3.shape == ref3.shape == (b2, s2, dim)
    assert jnp.allclose(out3, ref3, atol=2e-2, rtol=2e-2), \
        float(jnp.max(jnp.abs(out3 - ref3)))

    print("KERNEL_OK")
</pallas_src>

<mosaic_0001>
module attributes {stable_mosaic.version = 11 : i64} {
  func.func @_router_kernel(%arg0: i32, %arg1: memref<16x128xf32, #tpu.memory_space<vmem>>, %arg2: memref<16x128xf32, #tpu.memory_space<vmem>>, %arg3: memref<16x128xf32, #tpu.memory_space<vmem>>, %arg4: memref<128x128xf32, #tpu.memory_space<vmem>>, %arg5: memref<1x128xf32, #tpu.memory_space<vmem>>, %arg6: memref<128x128xf32, #tpu.memory_space<vmem>>, %arg7: memref<1x128xf32, #tpu.memory_space<vmem>>, %arg8: memref<128x128xf32, #tpu.memory_space<vmem>>, %arg9: memref<1x128xf32, #tpu.memory_space<vmem>>, %arg10: memref<16x128xf32, #tpu.memory_space<vmem>>) attributes {dimension_semantics = [#tpu.dimension_semantics<parallel>], iteration_bounds = array<i64: 1>, scalar_prefetch = 0 : i64, scratch_operands = 0 : i64, tpu.core_type = #tpu.core_type<tc>, window_params = [{transform_indices = @transform_0, window_bounds = array<i64: 16, 128>}, {transform_indices = @transform_1, window_bounds = array<i64: 16, 128>}, {transform_indices = @transform_2, window_bounds = array<i64: 16, 128>}, {pipeline_mode = #tpu.pipeline_mode<synchronous>, transform_indices = @transform_3, window_bounds = array<i64: 128, 128>}, {pipeline_mode = #tpu.pipeline_mode<synchronous>, transform_indices = @transform_4, window_bounds = array<i64: 1, 128>}, {pipeline_mode = #tpu.pipeline_mode<synchronous>, transform_indices = @transform_5, window_bounds = array<i64: 128, 128>}, {pipeline_mode = #tpu.pipeline_mode<synchronous>, transform_indices = @transform_6, window_bounds = array<i64: 1, 128>}, {pipeline_mode = #tpu.pipeline_mode<synchronous>, transform_indices = @transform_7, window_bounds = array<i64: 128, 128>}, {pipeline_mode = #tpu.pipeline_mode<synchronous>, transform_indices = @transform_8, window_bounds = array<i64: 1, 128>}, {transform_indices = @transform_9, window_bounds = array<i64: 16, 128>}]} {
    %c0 = arith.constant 0 : index
    %c0_0 = arith.constant 0 : index
    %0 = vector.load %arg1[%c0, %c0_0] : memref<16x128xf32, #tpu.memory_space<vmem>>, vector<16x128xf32>
    %c0_1 = arith.constant 0 : index
    %c0_2 = arith.constant 0 : index
    %1 = vector.load %arg2[%c0_1, %c0_2] : memref<16x128xf32, #tpu.memory_space<vmem>>, vector<16x128xf32>
    %c0_3 = arith.constant 0 : index
    %c0_4 = arith.constant 0 : index
    %2 = vector.load %arg3[%c0_3, %c0_4] : memref<16x128xf32, #tpu.memory_space<vmem>>, vector<16x128xf32>
    %c0_5 = arith.constant 0 : index
    %c0_6 = arith.constant 0 : index
    %3 = vector.load %arg4[%c0_5, %c0_6] : memref<128x128xf32, #tpu.memory_space<vmem>>, vector<128x128xf32>
    %cst = arith.constant dense<0.000000e+00> : vector<16x128xf32>
    %4 = tpu.matmul %0, %3, %cst {dimension_numbers = #tpu.dot_dimension_numbers<[1], [0], [0], [1], [0, 0, 1, 1], [], []>} : vector<16x128xf32>, vector<128x128xf32>, vector<16x128xf32> -> vector<16x128xf32>
    %c0_7 = arith.constant 0 : index
    %c0_8 = arith.constant 0 : index
    %5 = vector.load %arg5[%c0_7, %c0_8] : memref<1x128xf32, #tpu.memory_space<vmem>>, vector<1x128xf32>
    %6 = vector.broadcast %5 : vector<1x128xf32> to vector<16x128xf32>
    %7 = arith.addf %4, %6 : vector<16x128xf32>
    %c0_9 = arith.constant 0 : index
    %c0_10 = arith.constant 0 : index
    %8 = vector.load %arg6[%c0_9, %c0_10] : memref<128x128xf32, #tpu.memory_space<vmem>>, vector<128x128xf32>
    %cst_11 = arith.constant dense<0.000000e+00> : vector<16x128xf32>
    %9 = tpu.matmul %1, %8, %cst_11 {dimension_numbers = #tpu.dot_dimension_numbers<[1], [0], [0], [1], [0, 0, 1, 1], [], []>} : vector<16x128xf32>, vector<128x128xf32>, vector<16x128xf32> -> vector<16x128xf32>
    %c0_12 = arith.constant 0 : index
    %c0_13 = arith.constant 0 : index
    %10 = vector.load %arg7[%c0_12, %c0_13] : memref<1x128xf32, #tpu.memory_space<vmem>>, vector<1x128xf32>
    %11 = vector.broadcast %10 : vector<1x128xf32> to vector<16x128xf32>
    %12 = arith.addf %9, %11 : vector<16x128xf32>
    %c0_14 = arith.constant 0 : index
    %c0_15 = arith.constant 0 : index
    %13 = vector.load %arg8[%c0_14, %c0_15] : memref<128x128xf32, #tpu.memory_space<vmem>>, vector<128x128xf32>
    %cst_16 = arith.constant dense<0.000000e+00> : vector<16x128xf32>
    %14 = tpu.matmul %2, %13, %cst_16 {dimension_numbers = #tpu.dot_dimension_numbers<[1], [0], [0], [1], [0, 0, 1, 1], [], []>} : vector<16x128xf32>, vector<128x128xf32>, vector<16x128xf32> -> vector<16x128xf32>
    %c0_17 = arith.constant 0 : index
    %c0_18 = arith.constant 0 : index
    %15 = vector.load %arg9[%c0_17, %c0_18] : memref<1x128xf32, #tpu.memory_space<vmem>>, vector<1x128xf32>
    %16 = vector.broadcast %15 : vector<1x128xf32> to vector<16x128xf32>
    %17 = arith.addf %14, %16 : vector<16x128xf32>
    %18 = arith.mulf %7, %12 : vector<16x128xf32>
    %cst_19 = arith.constant dense<0.000000e+00> : vector<16xf32>
    %19 = vector.multi_reduction <add>, %18, %cst_19 [1] : vector<16x128xf32> to vector<16xf32>
    %20 = vector.shape_cast %19 : vector<16xf32> to vector<16x1xf32>
    %cst_20 = arith.constant 0.0883883461 : f32
    %21 = vector.broadcast %cst_20 : f32 to vector<16x1xf32>
    %22 = arith.mulf %20, %21 : vector<16x1xf32>
    %23 = arith.mulf %7, %17 : vector<16x128xf32>
    %cst_21 = arith.constant dense<0.000000e+00> : vector<16xf32>
    %24 = vector.multi_reduction <add>, %23, %cst_21 [1] : vector<16x128xf32> to vector<16xf32>
    %25 = vector.shape_cast %24 : vector<16xf32> to vector<16x1xf32>
    %cst_22 = arith.constant 0.0883883461 : f32
    %26 = vector.broadcast %cst_22 : f32 to vector<16x1xf32>
    %27 = arith.mulf %25, %26 : vector<16x1xf32>
    %28 = arith.subf %22, %27 : vector<16x1xf32>
    %cst_23 = arith.constant 0.000000e+00 : f32
    %29 = vector.broadcast %cst_23 : f32 to vector<16x1xf32>
    %30 = arith.subf %29, %28 : vector<16x1xf32>
    %31 = math.exp %30 : vector<16x1xf32>
    %cst_24 = arith.constant 1.000000e+00 : f32
    %32 = vector.broadcast %cst_24 : f32 to vector<16x1xf32>
    %33 = arith.addf %32, %31 : vector<16x1xf32>
    %cst_25 = arith.constant 1.000000e+00 : f32
    %34 = vector.broadcast %cst_25 : f32 to vector<16x1xf32>
    %35 = arith.divf %34, %33 : vector<16x1xf32>
    %cst_26 = arith.constant 1.000000e+00 : f32
    %36 = vector.broadcast %cst_26 : f32 to vector<16x1xf32>
    %37 = arith.subf %36, %35 : vector<16x1xf32>
    %38 = vector.broadcast %35 : vector<16x1xf32> to vector<16x128xf32>
    %39 = arith.mulf %38, %1 : vector<16x128xf32>
    %40 = vector.broadcast %37 : vector<16x1xf32> to vector<16x128xf32>
    %41 = arith.mulf %40, %2 : vector<16x128xf32>
    %42 = arith.addf %39, %41 : vector<16x128xf32>
    %c0_27 = arith.constant 0 : index
    %c0_28 = arith.constant 0 : index
    %43 = vector.load %arg10[%c0_27, %c0_28] : memref<16x128xf32, #tpu.memory_space<vmem>>, vector<16x128xf32>
    tpu.vector_store %arg10[%c0_27, %c0_28], %42 {strides = array<i32>} : memref<16x128xf32, #tpu.memory_space<vmem>>, vector<16x128xf32>,
    return
  }
  func.func @transform_0(%arg0: i32) -> (i32, i32) {
    %c0_i32 = arith.constant 0 : i32
    %c0_i32_0 = arith.constant 0 : i32
    return %arg0, %c0_i32 : i32, i32
  }
  func.func @transform_1(%arg0: i32) -> (i32, i32) {
    %c0_i32 = arith.constant 0 : i32
    %c0_i32_0 = arith.constant 0 : i32
    return %arg0, %c0_i32 : i32, i32
  }
  func.func @transform_2(%arg0: i32) -> (i32, i32) {
    %c0_i32 = arith.constant 0 : i32
    %c0_i32_0 = arith.constant 0 : i32
    return %arg0, %c0_i32 : i32, i32
  }
  func.func @transform_3(%arg0: i32) -> (i32, i32) {
    %c0_i32 = arith.constant 0 : i32
    %c0_i32_0 = arith.constant 0 : i32
    %c0_i32_1 = arith.constant 0 : i32
    return %c0_i32, %c0_i32_0 : i32, i32
  }
  func.func @transform_4(%arg0: i32) -> (i32, i32) {
    %c0_i32 = arith.constant 0 : i32
    %c0_i32_0 = arith.constant 0 : i32
    %c0_i32_1 = arith.constant 0 : i32
    return %c0_i32, %c0_i32_0 : i32, i32
  }
  func.func @transform_5(%arg0: i32) -> (i32, i32) {
    %c0_i32 = arith.constant 0 : i32
    %c0_i32_0 = arith.constant 0 : i32
    %c0_i32_1 = arith.constant 0 : i32
    return %c0_i32, %c0_i32_0 : i32, i32
  }
  func.func @transform_6(%arg0: i32) -> (i32, i32) {
    %c0_i32 = arith.constant 0 : i32
    %c0_i32_0 = arith.constant 0 : i32
    %c0_i32_1 = arith.constant 0 : i32
    return %c0_i32, %c0_i32_0 : i32, i32
  }
  func.func @transform_7(%arg0: i32) -> (i32, i32) {
    %c0_i32 = arith.constant 0 : i32
    %c0_i32_0 = arith.constant 0 : i32
    %c0_i32_1 = arith.constant 0 : i32
    return %c0_i32, %c0_i32_0 : i32, i32
  }
  func.func @transform_8(%arg0: i32) -> (i32, i32) {
    %c0_i32 = arith.constant 0 : i32
    %c0_i32_0 = arith.constant 0 : i32
    %c0_i32_1 = arith.constant 0 : i32
    return %c0_i32, %c0_i32_0 : i32, i32
  }
  func.func @transform_9(%arg0: i32) -> (i32, i32) {
    %c0_i32 = arith.constant 0 : i32
    %c0_i32_0 = arith.constant 0 : i32
    return %arg0, %c0_i32 : i32, i32
  }
}

</mosaic_0001>

<bundles_post_ra>
// kernel: tpu_custom_call.1
= control target key start
LH: loop header
LB: loop body
LE: loop exit
PB: predicated region body
PF: predicated region fallthrough
CT: control target
= control target key end

     0   :  { %14 = vsyncpa [#allocation3], 0  ;;  %s1120_s0 = inlined_call_operand.hbm [shape: f32[16,128], index: 0, kind: input, shape index: {}]   ;;  %s1121_s1 = inlined_call_operand.hbm [shape: f32[16,128], index: 1, kind: input, shape index: {}]   ;;  %s1122_s2 = inlined_call_operand.hbm [shape: f32[16,128], index: 2, kind: input, shape index: {}]   ;;  %s1123_s3 = inlined_call_operand.hbm [shape: f32[128,128], index: 3, kind: input, shape index: {}]   ;;  %s1124_s4 = inlined_call_operand.vmem [shape: f32[1,128], index: 4, kind: input, shape index: {}]   ;;  %s1125_s5 = inlined_call_operand.hbm [shape: f32[128,128], index: 5, kind: input, shape index: {}]   ;;  %s1126_s6 = inlined_call_operand.vmem [shape: f32[1,128], index: 6, kind: input, shape index: {}]   ;;  %s1127_s7 = inlined_call_operand.hbm [shape: f32[128,128], index: 7, kind: input, shape index: {}]   ;;  %s1128_s8 = inlined_call_operand.vmem [shape: f32[1,128], index: 8, kind: input, shape index: {}]   ;;  %s1129_s9 = inlined_call_operand.hbm [shape: f32[16,128], index: 9, kind: output, shape index: {}]  }
   0x1   :  { %15 = vsyncpa [#allocation6], 0 }
   0x2   :  { %16 = vsyncpa [#allocation9], 0 }
   0x3   :  { %17 = vsyncpa [#allocation12], 0 }
   0x4   :  { %18 = vsyncpa [#allocation4], 0  ;;  %s914_s30 = smov [#allocation5]   ;;  %s915_s11 = smov [#allocation8]  }
   0x5   :  { %s36_s10 = sshll.u32 %s914_s30, 4  ;;  %s60_s12 = sshll.u32 %s915_s11, 4  ;;  %s37_s10 = int_to_ptr.vmem [resolvable:$true] %s36_s10  ;;  %s973_s12 = int_to_ptr.vmem [resolvable:$true] %s60_s12 }
   0x6   :  { %s750_s15 = scalar_lea.hbm %s1121_s1, 256 }
   0x7   :  { %p751_p0 = scmp.ne.s32.totalorder %s1121_s1, %s750_s15  ;;  %p754_p1 = scmp.lt.u32.totalorder %s750_s15, %s1121_s1 }
   0x9   :  { %p756_p2 = pnand %p754_p1, %p751_p0 }
   0xb   :  { %759 = shalt.err (!%p756_p2)
}
   0xc   :  { %s760_s20 = scalar_lea.vmem %s37_s10, 256  ;;  %p765_p4 = scmp.lt.s32.totalorder %s37_s10, %s37_s10 }
   0xd   :  { %p761_p3 = scmp.ne.s32.totalorder %s37_s10, %s760_s20  ;;  %p766_p5 = scmp.lt.s32.totalorder %s760_s20, %s760_s20 }
   0xf   :  { %p767_p6 = por %p766_p5, %p765_p4 }
  0x11   :  { %p768_p7 = pnand %p767_p6, %p761_p3 }
  0x13   :  { %771 = shalt.err (!%p768_p7)
}
  0x14   :  { %s916_s21 = smov 128   ;;  %s917_s22 = smov 8  }
  0x15   :  { %42 = dma.hbm_to_vmem [thread:$0]  %s1121_s1, 256, %s37_s10, [#allocation6], %s916_s21, %s916_s21, %s917_s22  }
  0x16   :  { %s772_s27 = scalar_lea.hbm %s1123_s3, 2048 }
  0x17   :  { %p773_p8 = scmp.ne.s32.totalorder %s1123_s3, %s772_s27  ;;  %p776_p9 = scmp.lt.u32.totalorder %s772_s27, %s1123_s3 }
  0x19   :  { %p778_p10 = pnand %p776_p9, %p773_p8 }
  0x1b   :  { %781 = shalt.err (!%p778_p10)
}
  0x1c   :  { %s782_s13 = scalar_lea.vmem %s973_s12, 2048  ;;  %p787_p12 = scmp.lt.s32.totalorder %s973_s12, %s973_s12 }
  0x1d   :  { %p783_p11 = scmp.ne.s32.totalorder %s973_s12, %s782_s13  ;;  %p788_p13 = scmp.lt.s32.totalorder %s782_s13, %s782_s13 }
  0x1f   :  { %p789_p0 = por %p788_p13, %p787_p12 }
  0x21   :  { %p790_p1 = pnand %p789_p0, %p783_p11 }
  0x23   :  { %793 = shalt.err (!%p790_p1)
}
  0x24   :  { %66 = dma.hbm_to_vmem [thread:$0]  %s1123_s3, 2048, %s973_s12, [#allocation9], %s916_s21, %s916_s21, %s917_s22  }
  0x25   :  { %s918_s14 = smov [#allocation2]   ;;  %s919_s16 = smov [#allocation7]  }
  0x26   :  { %s24_s15 = sshll.u32 %s918_s14, 4  ;;  %s48_s17 = sshll.u32 %s919_s16, 4  ;;  %s25_s15 = int_to_ptr.vmem [resolvable:$true] %s24_s15  ;;  %s1010_s17 = int_to_ptr.vmem [resolvable:$true] %s48_s17 }
  0x27   :  { %s794_s20 = scalar_lea.hbm %s1120_s0, 256 }
  0x28   :  { %p795_p2 = scmp.ne.s32.totalorder %s1120_s0, %s794_s20  ;;  %p798_p3 = scmp.lt.u32.totalorder %s794_s20, %s1120_s0 }
  0x2a   :  { %p800_p4 = pnand %p798_p3, %p795_p2 }
  0x2c   :  { %803 = shalt.err (!%p800_p4)
}
  0x2d   :  { %s804_s3 = scalar_lea.vmem %s25_s15, 256  ;;  %p809_p6 = scmp.lt.s32.totalorder %s25_s15, %s25_s15 }
  0x2e   :  { %p805_p5 = scmp.ne.s32.totalorder %s25_s15, %s804_s3  ;;  %p810_p7 = scmp.lt.s32.totalorder %s804_s3, %s804_s3 }
  0x30   :  { %p811_p8 = por %p810_p7, %p809_p6 }
  0x32   :  { %p812_p9 = pnand %p811_p8, %p805_p5 }
  0x34   :  { %815 = shalt.err (!%p812_p9)
}
  0x35   :  { %30 = dma.hbm_to_vmem [thread:$0]  %s1120_s0, 256, %s25_s15, [#allocation3], %s916_s21, %s916_s21, %s917_s22  }
  0x36   :  { %s816_s30 = scalar_lea.hbm %s1122_s2, 256 }
  0x37   :  { %p817_p10 = scmp.ne.s32.totalorder %s1122_s2, %s816_s30  ;;  %p820_p11 = scmp.lt.u32.totalorder %s816_s30, %s1122_s2 }
  0x39   :  { %p822_p12 = pnand %p820_p11, %p817_p10 }
  0x3b   :  { %825 = shalt.err (!%p822_p12)
}
  0x3c   :  { %s826_s14 = scalar_lea.vmem %s1010_s17, 256  ;;  %p831_p0 = scmp.lt.s32.totalorder %s1010_s17, %s1010_s17 }
  0x3d   :  { %p827_p13 = scmp.ne.s32.totalorder %s1010_s17, %s826_s14  ;;  %p832_p1 = scmp.lt.s32.totalorder %s826_s14, %s826_s14 }
  0x3f   :  { %p833_p2 = por %p832_p1, %p831_p0 }
  0x41   :  { %p834_p3 = pnand %p833_p2, %p827_p13 }
  0x43   :  { %837 = shalt.err (!%p834_p3)
}
  0x44   :  { %54 = dma.hbm_to_vmem [thread:$0]  %s1122_s2, 256, %s1010_s17, [#allocation6], %s916_s21, %s916_s21, %s917_s22  }
  0x45   :  { %s920_s16 = smov [#allocation10]   ;;  %s921_s19 = smov [#allocation11]  }
  0x46   :  { %s74_s18 = sshll.u32 %s920_s16, 4  ;;  %s88_s20 = sshll.u32 %s921_s19, 4  ;;  %s75_s18 = int_to_ptr.vmem [resolvable:$true] %s74_s18  ;;  %s1047_s20 = int_to_ptr.vmem [resolvable:$true] %s88_s20 }
  0x47   :  { %s838_s25 = scalar_lea.hbm %s1125_s5, 2048 }
  0x48   :  { %p839_p4 = scmp.ne.s32.totalorder %s1125_s5, %s838_s25  ;;  %p842_p5 = scmp.lt.u32.totalorder %s838_s25, %s1125_s5 }
  0x4a   :  { %p844_p6 = pnand %p842_p5, %p839_p4 }
  0x4c   :  { %847 = shalt.err (!%p844_p6)
}
  0x4d   :  { %s848_s2 = scalar_lea.vmem %s75_s18, 2048  ;;  %p853_p8 = scmp.lt.s32.totalorder %s75_s18, %s75_s18 }
  0x4e   :  { %p849_p7 = scmp.ne.s32.totalorder %s75_s18, %s848_s2  ;;  %p854_p9 = scmp.lt.s32.totalorder %s848_s2, %s848_s2 }
  0x50   :  { %p855_p10 = por %p854_p9, %p853_p8 }
  0x52   :  { %p856_p11 = pnand %p855_p10, %p849_p7 }
  0x54   :  { %859 = shalt.err (!%p856_p11)
}
  0x55   :  { %80 = dma.hbm_to_vmem [thread:$0]  %s1125_s5, 2048, %s75_s18, [#allocation9], %s916_s21, %s916_s21, %s917_s22  }
  0x56   :  { %s860_s11 = scalar_lea.hbm %s1127_s7, 2048 }
  0x57   :  { %p861_p12 = scmp.ne.s32.totalorder %s1127_s7, %s860_s11  ;;  %p864_p13 = scmp.lt.u32.totalorder %s860_s11, %s1127_s7 }
  0x59   :  { %p866_p0 = pnand %p864_p13, %p861_p12 }
  0x5b   :  { %869 = shalt.err (!%p866_p0)
}
  0x5c   :  { %s870_s0 = scalar_lea.vmem %s1047_s20, 2048  ;;  %p875_p2 = scmp.lt.s32.totalorder %s1047_s20, %s1047_s20 }
  0x5d   :  { %p871_p1 = scmp.ne.s32.totalorder %s1047_s20, %s870_s0  ;;  %p876_p3 = scmp.lt.s32.totalorder %s870_s0, %s870_s0 }
  0x5f   :  { %p877_p4 = por %p876_p3, %p875_p2 }
  0x61   :  { %p878_p5 = pnand %p877_p4, %p871_p1 }
  0x63   :  { %881 = shalt.err (!%p878_p5)
}
  0x64   :  { %94 = dma.hbm_to_vmem [thread:$0]  %s1127_s7, 2048, %s1047_s20, [#allocation12], %s916_s21, %s916_s21, %s917_s22  }
  0x65   :  { %904 = dma.done.wait [#allocation3], 256  }
  0x66   :  { %905 = vsyncadd [#allocation3], 4294967040 }
  0x67   :  { %906 = dma.done.wait [#allocation6], 512  }
  0x68   :  { %907 = vsyncadd [#allocation6], 4294966784 }
  0x69   :  { %908 = dma.done.wait [#allocation9], 4096  }
  0x6a   :  { %909 = vsyncadd [#allocation9], 4294963200 }
  0x6b   :  { %910 = dma.done.wait [#allocation12], 2048  }
  0x6c   :  { %911 = vsyncadd [#allocation12], 4294965248  ;;  %v121_v0 = vld [vmem:[#allocation8] sm:$0xff]  ;;  %v122_v1 = vld [vmem:[#allocation8 + $0x8] sm:$0xff] }
  0x6d   :  { %v219_v2 = vld [vmem:[#allocation10] sm:$0xff]  ;;  %v637_v3 = vpack.c.bf16 %v122_v1, %v121_v0  ;;  %v220_v4 = vld [vmem:[#allocation10 + $0x8] sm:$0xff]  ;;  %v123_v5 = vld [vmem:[#allocation8 + $0x10] sm:$0xff] }
  0x6e   :  { %v124_v6 = vld [vmem:[#allocation8 + $0x18] sm:$0xff]  ;;  %v669_v7 = vpack.c.bf16 %v220_v4, %v219_v2  ;;  %v221_v9 = vld [vmem:[#allocation10 + $0x10] sm:$0xff]  ;;  %v125_v11 = vld [vmem:[#allocation8 + $0x20] sm:$0xff] }
  0x6f   :  { %v641_v8 = vpack.c.bf16 %v124_v6, %v123_v5  ;;  %v222_v10 = vld [vmem:[#allocation10 + $0x18] sm:$0xff]  ;;  %638 = vmatprep.subr.bf16.mxu0 %v637_v3  ;;  %v126_v13 = vld [vmem:[#allocation8 + $0x28] sm:$0xff]  ;;  %v223_v14 = vld [vmem:[#allocation10 + $0x20] sm:$0xff] }
  0x70   :  { %v673_v12 = vpack.c.bf16 %v222_v10, %v221_v9  ;;  %v224_v15 = vld [vmem:[#allocation10 + $0x28] sm:$0xff]  ;;  %670 = vmatprep.subr.bf16.mxu1 %v669_v7  ;;  %640 = vmatpush3.bf16.msra.mxu0 %v637_v3  ;;  %v645_v16 = vpack.c.bf16 %v126_v13, %v125_v11  ;;  %v127_v18 = vld [vmem:[#allocation8 + $0x30] sm:$0xff]  ;;  %v128_v19 = vld [vmem:[#allocation8 + $0x38] sm:$0xff] }
  0x71   :  { %672 = vmatpush3.bf16.msra.mxu1 %v669_v7  ;;  %642 = vmatprep.subr.bf16.mxu0 %v641_v8  ;;  %v677_v17 = vpack.c.bf16 %v224_v15, %v223_v14  ;;  %v225_v20 = vld [vmem:[#allocation10 + $0x30] sm:$0xff]  ;;  %v226_v21 = vld [vmem:[#allocation10 + $0x38] sm:$0xff]  ;;  %v649_v22 = vpack.c.bf16 %v128_v19, %v127_v18  ;;  %v129_v24 = vld [vmem:[#allocation8 + $0x40] sm:$0xff] }
  0x72   :  { %674 = vmatprep.subr.bf16.mxu1 %v673_v12  ;;  %v681_v23 = vpack.c.bf16 %v226_v21, %v225_v20  ;;  %v130_v25 = vld [vmem:[#allocation8 + $0x48] sm:$0xff]  ;;  %v115_v26 = vld [vmem:[#allocation2] sm:$0xff]  ;;  %v227_v27 = vld [vmem:[#allocation10 + $0x40] sm:$0xff] }
  0x73   :  { %v228_v28 = vld [vmem:[#allocation10 + $0x48] sm:$0xff]  ;;  %564 = vmatprep.mubr.f32.mxu0 %v115_v26  ;;  %v1084_v29 = vld [vmem:[#allocation5] sm:$0xff]  ;;  %v653_v30 = vpack.c.bf16 %v130_v25, %v129_v24  ;;  %v131_v32 = vld [vmem:[#allocation8 + $0x50] sm:$0xff] }
  0x74   :  { %644 = vmatpush3.bf16.msra.mxu0 %v641_v8  ;;  %599 = vmatprep.mubr.f32.mxu1 %v1084_v29  ;;  %v685_v31 = vpack.c.bf16 %v228_v28, %v227_v27  ;;  %v132_v33 = vld [vmem:[#allocation8 + $0x58] sm:$0xff]  ;;  %v229_v34 = vld [vmem:[#allocation10 + $0x50] sm:$0xff]  ;;  %v133_v38 = vld [vmem:[#allocation8 + $0x60] sm:$0xff] }
  0x75   :  { %676 = vmatpush3.bf16.msra.mxu1 %v673_v12  ;;  %646 = vmatprep.subr.bf16.mxu0 %v645_v16  ;;  %v230_v35 = vld [vmem:[#allocation10 + $0x58] sm:$0xff]  ;;  %v657_v36 = vpack.c.bf16 %v132_v33, %v131_v32  ;;  %v134_v39 = vld [vmem:[#allocation8 + $0x68] sm:$0xff]  ;;  %v231_v40 = vld [vmem:[#allocation10 + $0x60] sm:$0xff] }
  0x76   :  { %678 = vmatprep.subr.bf16.mxu1 %v677_v17  ;;  %v689_v37 = vpack.c.bf16 %v230_v35, %v229_v34  ;;  %v232_v41 = vld [vmem:[#allocation10 + $0x68] sm:$0xff]  ;;  %v661_v42 = vpack.c.bf16 %v134_v39, %v133_v38  ;;  %v135_v44 = vld [vmem:[#allocation8 + $0x70] sm:$0xff]  ;;  %v136_v45 = vld [vmem:[#allocation8 + $0x78] sm:$0xff] }
  0x77   :  { %v693_v43 = vpack.c.bf16 %v232_v41, %v231_v40  ;;  %v233_v46 = vld [vmem:[#allocation10 + $0x70] sm:$0xff]  ;;  %v234_v47 = vld [vmem:[#allocation10 + $0x78] sm:$0xff]  ;;  %v665_v48 = vpack.c.bf16 %v136_v45, %v135_v44  ;;  %v317_v50 = vld [vmem:[#allocation11] sm:$0xff] }
  0x78   :  { %648 = vmatpush3.bf16.msra.mxu0 %v645_v16  ;;  %v697_v49 = vpack.c.bf16 %v234_v47, %v233_v46  ;;  %v318_v51 = vld [vmem:[#allocation11 + $0x8] sm:$0xff]  ;;  %v319_v53 = vld [vmem:[#allocation11 + $0x10] sm:$0xff]  ;;  %v320_v54 = vld [vmem:[#allocation11 + $0x18] sm:$0xff] }
  0x79   :  { %680 = vmatpush3.bf16.msra.mxu1 %v677_v17  ;;  %650 = vmatprep.subr.bf16.mxu0 %v649_v22  ;;  %v701_v52 = vpack.c.bf16 %v318_v51, %v317_v50  ;;  %v116_v55 = vld [vmem:[#allocation2 + $0x8] sm:$0xff]  ;;  %v1087_v56 = vld [vmem:[#allocation5 + $0x8] sm:$0xff]  ;;  %v705_v57 = vpack.c.bf16 %v320_v54, %v319_v53  ;;  %v321_v58 = vld [vmem:[#allocation11 + $0x20] sm:$0xff] }
  0x7a   :  { %682 = vmatprep.subr.bf16.mxu1 %v681_v23  ;;  %v322_v59 = vld [vmem:[#allocation11 + $0x28] sm:$0xff]  ;;  %v1089_v60 = vld [vmem:[#allocation7] sm:$0xff]  ;;  %v324_v63 = vld [vmem:[#allocation11 + $0x38] sm:$0xff] }
  0x7b   :  { %v709_v61 = vpack.c.bf16 %v322_v59, %v321_v58  ;;  %v323_v62 = vld [vmem:[#allocation11 + $0x30] sm:$0xff]  ;;  %v325_v1 = vld [vmem:[#allocation11 + $0x40] sm:$0xff]  ;;  %v326_v2 = vld [vmem:[#allocation11 + $0x48] sm:$0xff] }
  0x7c   :  { %652 = vmatpush3.bf16.msra.mxu0 %v649_v22  ;;  %v713_v0 = vpack.c.bf16 %v324_v63, %v323_v62  ;;  %v717_v3 = vpack.c.bf16 %v326_v2, %v325_v1  ;;  %v327_v4 = vld [vmem:[#allocation11 + $0x50] sm:$0xff]  ;;  %v328_v5 = vld [vmem:[#allocation11 + $0x58] sm:$0xff]  ;;  %v329_v7 = vld [vmem:[#allocation11 + $0x60] sm:$0xff] }
  0x7d   :  { %684 = vmatpush3.bf16.msra.mxu1 %v681_v23  ;;  %654 = vmatprep.subr.bf16.mxu0 %v653_v30  ;;  %v721_v6 = vpack.c.bf16 %v328_v5, %v327_v4  ;;  %v330_v8 = vld [vmem:[#allocation11 + $0x68] sm:$0xff]  ;;  %v331_v10 = vld [vmem:[#allocation11 + $0x70] sm:$0xff]  ;;  %v332_v11 = vld [vmem:[#allocation11 + $0x78] sm:$0xff] }
  0x7e   :  { %686 = vmatprep.subr.bf16.mxu1 %v685_v31  ;;  %v725_v9 = vpack.c.bf16 %v330_v8, %v329_v7  ;;  %v729_v12 = vpack.c.bf16 %v332_v11, %v331_v10  ;;  %v120_v13 = vld [vmem:[#allocation7 + $0x8] sm:$0xff]  ;;  %v475_v14 = vld [vmem:[%s1124_s4] ss:$0 sm:$0xff]  ;;  %s922_s4 = smov [#allocation13]  }
  0x7f   :  { %v476_v15 = vld [vmem:[%s1126_s6] ss:$0 sm:$0xff]  ;;  %s460_s6 = sshll.u32 %s922_s4, 4  ;;  %s461_s6 = int_to_ptr.vmem [resolvable:$true] %s460_s6 }
  0x80   :  { %656 = vmatpush3.bf16.msra.mxu0 %v653_v30  ;;  %v477_v26 = vld [vmem:[%s1128_s8] ss:$0 sm:$0xff]  ;;  %s882_s8 = scalar_lea.vmem %s461_s6, 256  ;;  %p887_p7 = scmp.lt.s32.totalorder %s461_s6, %s461_s6 }
  0x81   :  { %688 = vmatpush3.bf16.msra.mxu1 %v685_v31  ;;  %658 = vmatprep.subr.bf16.mxu0 %v657_v36  ;;  %p883_p6 = scmp.ne.s32.totalorder %s461_s6, %s882_s8  ;;  %p888_p8 = scmp.lt.s32.totalorder %s882_s8, %s882_s8 }
  0x82   :  { %690 = vmatprep.subr.bf16.mxu1 %v689_v37 }
  0x83   :  { %p889_p9 = por %p888_p8, %p887_p7 }
  0x84   :  { %660 = vmatpush3.bf16.msra.mxu0 %v657_v36 }
  0x85   :  { %692 = vmatpush3.bf16.msra.mxu1 %v689_v37  ;;  %662 = vmatprep.subr.bf16.mxu0 %v661_v42  ;;  %p890_p10 = pnand %p889_p9, %p883_p6 }
  0x86   :  { %694 = vmatprep.subr.bf16.mxu1 %v693_v43 }
  0x88   :  { %664 = vmatpush3.bf16.msra.mxu0 %v661_v42 }
  0x89   :  { %696 = vmatpush3.bf16.msra.mxu1 %v693_v43  ;;  %666 = vmatprep.subr.bf16.mxu0 %v665_v48 }
  0x8a   :  { %698 = vmatprep.subr.bf16.mxu1 %v697_v49 }
  0x8c   :  { %668 = vmatpush3.bf16.msra.mxu0 %v665_v48 }
  0x8d   :  { %700 = vmatpush3.bf16.msra.mxu1 %v697_v49  ;;  %702 = vmatprep.subr.bf16.mxu0 %v701_v52 }
  0x8f   :  { %565 = vmatmul.mubr.f32.vlgmr.msra.gmra.mrb[0].mxu0 %v116_v55 }
  0x90   :  { %600 = vmatmul.mubr.f32.vlgmr.msra.gmra.mrb[0].mxu1 %v1087_v56  ;;  %704 = vmatpush3.bf16.msra.mxu0 %v701_v52 }
  0x91   :  { %706 = vmatprep.subr.bf16.mxu0 %v705_v57  ;;  %634 = vmatprep.mubr.f32.mxu0 %v1089_v60 }
  0x94   :  { %708 = vmatpush3.bf16.msra.mxu0 %v705_v57 }
  0x95   :  { %710 = vmatprep.subr.bf16.mxu0 %v709_v61 }
  0x98   :  { %712 = vmatpush3.bf16.msra.mxu0 %v709_v61 }
  0x99   :  { %714 = vmatprep.subr.bf16.mxu0 %v713_v0 }
  0x9c   :  { %716 = vmatpush3.bf16.msra.mxu0 %v713_v0 }
  0x9d   :  { %718 = vmatprep.subr.bf16.mxu0 %v717_v3 }
  0xa0   :  { %720 = vmatpush3.bf16.msra.mxu0 %v717_v3 }
  0xa1   :  { %722 = vmatprep.subr.bf16.mxu0 %v721_v6 }
  0xa4   :  { %724 = vmatpush3.bf16.msra.mxu0 %v721_v6 }
  0xa5   :  { %726 = vmatprep.subr.bf16.mxu0 %v725_v9 }
  0xa8   :  { %728 = vmatpush3.bf16.msra.mxu0 %v725_v9 }
  0xa9   :  { %730 = vmatprep.subr.bf16.mxu0 %v729_v12 }
  0xac   :  { %732 = vmatpush3.bf16.msra.mxu0 %v729_v12 }
  0xaf   :  { %635 = vmatmul.mubr.f32.vlgmr.msra.gmra.mrb[2].mxu0 %v120_v13 }
 0x162   :  { %v566_v16 = vpop.f32.mrb[0].mxu0 }
 0x163   :  { %v216_v17 = vadd.f32 %v566_v16, %v475_v14  ;;  %v601_v18 = vpop.f32.mrb[0].mxu1  ;;  %v210_v19 = vpop.f32.mrb[1].mxu0 }
 0x164   :  { %v314_v20 = vadd.f32 %v601_v18, %v476_v15  ;;  %v211_v21 = vadd.f32 %v475_v14, %v210_v19  ;;  %v308_v22 = vpop.f32.mrb[1].mxu1 }
 0x165   :  { %v309_v23 = vadd.f32 %v476_v15, %v308_v22 }
 0x166   :  { %v416_v24 = vmul.f32 %v314_v20, %v216_v17 }
 0x167   :  { %v415_v25 = vmul.f32 %v309_v23, %v211_v21 }
 0x169   :  { %417 = vadd.xlane.f32.xlu0 %v415_v25 }
 0x16d   :  { %419 = vadd.xlane.f32.xlu0 %v416_v24 }
 0x182   :  { %v636_v27 = vpop.f32.mrb[2].mxu0 }
 0x183   :  { %v412_v28 = vadd.f32 %v636_v27, %v477_v26  ;;  %v406_v30 = vpop.f32.mrb[3].mxu0 }
 0x184   :  { %v407_v31 = vadd.f32 %v477_v26, %v406_v30 }
 0x185   :  { %v424_v32 = vmul.f32 %v412_v28, %v216_v17 }
 0x186   :  { %v423_v33 = vmul.f32 %v407_v31, %v211_v21 }
 0x188   :  { %425 = vadd.xlane.f32.xlu1 %v423_v33 }
 0x18c   :  { %427 = vadd.xlane.f32.xlu1 %v424_v32 }
 0x1f6   :  { %v418_v34 = vpop.xlane.xlu0 %417 }
 0x1f7   :  { %v421_v36 = vmul.f32 0.088388346, %v418_v34 }
 0x1fa   :  { %v420_v38 = vpop.xlane.xlu0 %419 }
 0x1fb   :  { %v422_v41 = vmul.f32 0.088388346, %v420_v38 }
 0x215   :  { %v426_v35 = vpop.xlane.xlu1 %425 }
 0x216   :  { %v429_v37 = vmul.f32 0.088388346, %v426_v35 }
 0x218   :  { %v431_v39 = vsub.f32 %v421_v36, %v429_v37 }
 0x219   :  { %v428_v40 = vpop.xlane.xlu1 %427 }
 0x21a   :  { %v433_v42 = vsub.f32 0.0, %v431_v39  ;;  %v430_v43 = vmul.f32 0.088388346, %v428_v40 }
 0x21c   :  { %v435_v44 = vmul.f32 1.442695, %v433_v42  ;;  %v432_v45 = vsub.f32 %v422_v41, %v430_v43 }
 0x21e   :  { %742 = vpow2.f32 %v435_v44  ;;  %v434_v46 = vsub.f32 0.0, %v432_v45 }
 0x220   :  { %v437_v47 = vmul.f32 1.442695, %v434_v46 }
 0x222   :  { %744 = vpow2.f32 %v437_v47 }
 0x228   :  { %v743_v48 = vpop.eup %742 }
 0x229   :  { %v439_v49 = vadd.f32 1.0, %v743_v48 }
 0x22b   :  { %746 = vrcp.f32 %v439_v49 }
 0x22c   :  { %v745_v50 = vpop.eup %744 }
 0x22d   :  { %v440_v51 = vadd.f32 1.0, %v745_v50 }
 0x22f   :  { %748 = vrcp.f32 %v440_v51 }
 0x235   :  { %v747_v52 = vpop.eup %746 }
 0x236   :  { %v445_v53 = vsub.f32 1.0, %v747_v52  ;;  %v447_v54 = vmul.f32 %v747_v52, %v1084_v29 }
 0x238   :  { %v449_v55 = vmul.f32 %v445_v53, %v1089_v60 }
 0x239   :  { %v749_v57 = vpop.eup %748 }
 0x23a   :  { %v446_v58 = vsub.f32 1.0, %v749_v57  ;;  %v451_v59 = vadd.f32 %v449_v55, %v447_v54  ;;  %v448_v61 = vmul.f32 %v749_v57, %v1087_v56 }
 0x23c   :  { %v450_v62 = vmul.f32 %v446_v58, %v120_v13  ;;  %453 = vst [vmem:[#allocation13] sm:$0xff] %v451_v59 }
 0x23e   :  { %v452_v63 = vadd.f32 %v450_v62, %v448_v61 }
 0x240   :  { %454 = vst [vmem:[#allocation13 + $0x8] sm:$0xff] %v452_v63 }
 0x241   :  { %893 = shalt.err (!%p890_p10)
}
 0x242   :  { %s894_s26 = scalar_lea.hbm %s1129_s9, 256 }
 0x243   :  { %p895_p11 = scmp.ne.s32.totalorder %s1129_s9, %s894_s26  ;;  %p898_p12 = scmp.lt.u32.totalorder %s894_s26, %s1129_s9 }
 0x245   :  { %p900_p13 = pnand %p898_p12, %p895_p11 }
 0x247   :  { %903 = shalt.err (!%p900_p13)
}
 0x248   :  { %466 = dma.vmem_to_hbm [thread:$0]  %s461_s6, 256, %s1129_s9, [#allocation4], %s916_s21, %s916_s21, %s917_s22  }
 0x249   :  { %912 = dma.done.wait [#allocation4], 256  }
 0x24a   :  { %913 = vsyncadd [#allocation4], 4294967040 }
 0x24b   :  { %470 = vsyncpa [#allocation3], 1 }
 0x24c   :  { %471 = vsyncpa [#allocation6], 1 }
 0x24d   :  { %472 = vsyncpa [#allocation9], 1 }
 0x24e   :  { %473 = vsyncpa [#allocation12], 1 }
 0x24f   :  { %474 = vsyncpa [#allocation4], 1 }

</bundles_post_ra>
